<compile_context>
chip_gen: v7x
topology: tpu7x:2x2x1
jax: 0.10.0
libtpu: 0.0.40
codegen_flags: <defaults>
</compile_context>

<pallas_src>
import math

import jax
import jax.numpy as jnp
from jax.experimental import pallas as pl
from jax.experimental.pallas import tpu as pltpu


# ------------------------------ activations -------------------------------- #
def _gelu_tanh_f32(y):
    # tanh-approx GELU (EUP path); all constants are Python floats (no captured consts)
    c = 0.7978845608028654  # sqrt(2/pi)
    return 0.5 * y * (1.0 + jnp.tanh(c * (y + 0.044715 * y * y * y)))


def _gelu_exact_f32(y):
    # exact (erf) GELU — used only by the pure-JAX reference
    return 0.5 * y * (1.0 + jax.lax.erf(y * 0.7071067811865476))


# ----------------------------- Pallas kernel ------------------------------- #
def _build_dueling_kernel(layer_meta, head_meta):
    """refs = (x, w_slab, b_slab, q_out).  layer_meta / head_meta are static
    (col_offset, in_dim, out_dim) tuples describing slices of the packed slabs."""

    def kernel(x_ref, w_ref, b_ref, q_ref):
        # body: [Linear -> GELU] x N, activations never leave VMEM/vregs
        h = x_ref[...].astype(jnp.float32)  # keep raw input f32 (no quantization)
        for li, (off, in_dim, out_dim) in enumerate(layer_meta):
            w = w_ref[:in_dim, off:off + out_dim]          # static slice of bf16 slab
            b = b_ref[:, off:off + out_dim]                # static slice of f32 biases
            if li == 0:
                w = w.astype(jnp.float32)                  # tiny K matmul: f32 is free
            y = jnp.dot(h, w, preferred_element_type=jnp.float32) + b
            h = _gelu_tanh_f32(y).astype(jnp.bfloat16)     # bf16 feed for next MXU op

        # head: dueling combine already folded into (feat, A) weights at pack time
        off, in_dim, out_dim = head_meta
        w = w_ref[:in_dim, off:off + out_dim]
        b = b_ref[:, off:off + out_dim]
        q = jnp.dot(h, w, preferred_element_type=jnp.float32) + b
        q_ref[...] = q.astype(q_ref.dtype)

    return kernel


def dueling_forward(packed, x, *, tile_b=128):
    """Fused DuelingNet forward: one pallas_call for body + folded dueling head."""
    w_slab, b_slab, layer_meta, head_meta = packed
    B = int(x.shape[0])
    action_dim = head_meta[2]
    kernel = _build_dueling_kernel(layer_meta, head_meta)
    out_shape = jax.ShapeDtypeStruct((B, action_dim), jnp.float32)

    if B % tile_b == 0 and B >= 2 * tile_b:
        # batch-gridded path: x / q tiled over batch, params VMEM-resident across steps
        in0 = int(x.shape[1])
        grid_spec = pltpu.PrefetchScalarGridSpec(
            num_scalar_prefetch=0,
            grid=(B // tile_b,),
            in_specs=[
                pl.BlockSpec((tile_b, in0), lambda i: (i, 0)),
                pl.BlockSpec(w_slab.shape, lambda i: (0, 0)),
                pl.BlockSpec(b_slab.shape, lambda i: (0, 0)),
            ],
            out_specs=pl.BlockSpec((tile_b, action_dim), lambda i: (i, 0)),
        )
        return pl.pallas_call(
            kernel,
            out_shape=out_shape,
            grid_spec=grid_spec,
            compiler_params=pltpu.CompilerParams(
                dimension_semantics=("parallel",),   # both TCs on v7x
                vmem_limit_bytes=32 * 1024 * 1024,   # explicit; fits all of v5e/v6e/v7x
            ),
        )(x, w_slab, b_slab)

    # toy / small-batch path: gridless, 3 whole-array VMEM input DMAs total
    vmem = lambda: pl.BlockSpec(memory_space=pltpu.MemorySpace.VMEM)
    return pl.pallas_call(
        kernel,
        out_shape=out_shape,
        in_specs=[vmem(), vmem(), vmem()],
        out_specs=vmem(),
    )(x, w_slab, b_slab)


# ------------------------- parameter init / packing ------------------------ #
def orthogonal(key, rows, cols):
    """Deterministic orthogonal init (mirrors nn.init.orthogonal_ semantics)."""
    n = max(rows, cols)
    a = jax.random.normal(key, (n, n), dtype=jnp.float32)
    q, r = jnp.linalg.qr(a)
    d = jnp.sign(jnp.diag(r))
    d = jnp.where(d == 0, 1.0, d)  # robustness for exactly-zero diagonal entries
    q = q * d[None, :]
    return q[:rows, :cols]


def init_dueling_params(key, input_size, layer_sizes, action_dim, w_scale=1.0):
    """Raw (PyTorch-shaped) parameters: body [(w,b)...], head (w_v, b_v, w_a, b_a)."""
    sizes = (input_size,) + tuple(layer_sizes)
    body = []
    for din, dout in zip(sizes[:-1], sizes[1:]):
        key, sub = jax.random.split(key)
        w = (orthogonal(sub, dout, din) * w_scale).T  # (in, out)
        body.append((w.astype(jnp.float32), jnp.zeros((dout,), jnp.float32)))

    feat = sizes[-1]
    bound = 1.0 / math.sqrt(feat)
    key, k1, k2, k3, k4 = jax.random.split(key, 5)
    w_v = jax.random.uniform(k1, (feat, 1), jnp.float32, -bound, bound)
    b_v = jax.random.uniform(k2, (1,), jnp.float32, -bound, bound)
    w_a = jax.random.uniform(k3, (feat, action_dim), jnp.float32, -bound, bound)
    b_a = jax.random.uniform(k4, (action_dim,), jnp.float32, -bound, bound)
    return body, (w_v, b_v, w_a, b_a)


def pack_dueling_params(raw_params):
    """Fold dueling combine into the head and pack everything into 2 slabs.

    Returns (w_slab bf16 [max_in, sum_out], b_slab f32 [1, sum_out],
             layer_meta, head_meta) with static (col_offset, in_dim, out_dim) tuples.
    Refold/repack after every parameter update if params are trained.
    """
    body, (w_v, b_v, w_a, b_a) = raw_params
    # exact identity: q = phi @ W_q + b_q  reproduces  v + (a - mean(a))
    w_q = w_v + w_a - jnp.mean(w_a, axis=1, keepdims=True)   # (feat, A)
    b_q = b_v + b_a - jnp.mean(b_a)                          # (A,)

    mats = [(w.astype(jnp.float32), b.astype(jnp.float32)) for w, b in body]
    mats.append((w_q.astype(jnp.float32), b_q.astype(jnp.float32)))

    max_in = max(int(w.shape[0]) for w, _ in mats)
    w_cols, b_cols, meta = [], [], []
    off = 0
    for w, b in mats:
        in_dim, out_dim = int(w.shape[0]), int(w.shape[1])
        wp = jnp.zeros((max_in, out_dim), jnp.float32).at[:in_dim, :].set(w)
        w_cols.append(wp)
        b_cols.append(b.reshape(1, -1))
        meta.append((off, in_dim, out_dim))
        off += out_dim
    w_slab = jnp.concatenate(w_cols, axis=1).astype(jnp.bfloat16)
    b_slab = jnp.concatenate(b_cols, axis=1).astype(jnp.float32)
    return w_slab, b_slab, tuple(meta[:-1]), meta[-1]


# --------------------------- pure-JAX reference ----------------------------- #
def dueling_reference(raw_params, x):
    """f32, erf-GELU, un-folded dueling head — matches the PyTorch module."""
    body, (w_v, b_v, w_a, b_a) = raw_params
    h = x.astype(jnp.float32)
    for w, b in body:
        h = _gelu_exact_f32(h @ w + b)
    v = h @ w_v + b_v
    a = h @ w_a + b_a
    return v + (a - a.mean(axis=1, keepdims=True))


# ---------------------------------- main ------------------------------------ #
if __name__ == "__main__":
    key = jax.random.PRNGKey(0)
    input_size = 16
    layer_sizes = (256, 256)
    action_dim = 6

    pkey, xkey, xkey2 = jax.random.split(key, 3)
    raw = init_dueling_params(pkey, input_size, layer_sizes, action_dim)
    packed = pack_dueling_params(raw)

    # small batch -> gridless single-shot kernel
    x = jax.random.normal(xkey, (8, input_size), dtype=jnp.float32)
    q = jax.block_until_ready(dueling_forward(packed, x))
    assert q.shape == (8, action_dim)
    assert bool(jnp.all(jnp.isfinite(q)))
    q_ref = dueling_reference(raw, x)
    rel = jnp.max(jnp.abs(q - q_ref)) / (jnp.max(jnp.abs(q_ref)) + 1e-6)
    assert float(rel) < 1e-1, f"small-batch relative error too large: {float(rel)}"

    # larger batch -> batch-gridded path (pipelined x/q tiles; parallel across TCs on v7x)
    xb = jax.random.normal(xkey2, (256, input_size), dtype=jnp.float32)
    qb = jax.block_until_ready(dueling_forward(packed, xb, tile_b=128))
    assert qb.shape == (256, action_dim)
    assert bool(jnp.all(jnp.isfinite(qb)))
    qb_ref = dueling_reference(raw, xb)
    relb = jnp.max(jnp.abs(qb - qb_ref)) / (jnp.max(jnp.abs(qb_ref)) + 1e-6)
    assert float(relb) < 1e-1, f"gridded relative error too large: {float(relb)}"

    print("KERNEL_OK")
</pallas_src>

<mosaic_0001>
module attributes {stable_mosaic.version = 11 : i64} {
  func.func @kernel(%arg0: memref<8x16xf32, #tpu.memory_space<vmem>>, %arg1: memref<256x518xbf16, #tpu.memory_space<vmem>>, %arg2: memref<1x518xf32, #tpu.memory_space<vmem>>, %arg3: memref<8x6xf32, #tpu.memory_space<vmem>>) attributes {dimension_semantics = [], scalar_prefetch = 0 : i64, scratch_operands = 0 : i64, tpu.core_type = #tpu.core_type<tc>} {
    %c0 = arith.constant 0 : index
    %c0_0 = arith.constant 0 : index
    %0 = vector.load %arg0[%c0, %c0_0] : memref<8x16xf32, #tpu.memory_space<vmem>>, vector<8x16xf32>
    %c0_1 = arith.constant 0 : index
    %c0_2 = arith.constant 0 : index
    %1 = vector.load %arg1[%c0_1, %c0_2] : memref<256x518xbf16, #tpu.memory_space<vmem>>, vector<16x256xbf16>
    %c0_3 = arith.constant 0 : index
    %c0_4 = arith.constant 0 : index
    %2 = vector.load %arg2[%c0_3, %c0_4] : memref<1x518xf32, #tpu.memory_space<vmem>>, vector<1x256xf32>
    %3 = arith.extf %1 : vector<16x256xbf16> to vector<16x256xf32>
    %cst = arith.constant dense<0.000000e+00> : vector<8x256xf32>
    %4 = tpu.matmul %0, %3, %cst {dimension_numbers = #tpu.dot_dimension_numbers<[1], [0], [0], [1], [0, 0, 1, 1], [], []>} : vector<8x16xf32>, vector<16x256xf32>, vector<8x256xf32> -> vector<8x256xf32>
    %5 = vector.broadcast %2 : vector<1x256xf32> to vector<8x256xf32>
    %6 = arith.addf %4, %5 : vector<8x256xf32>
    %cst_5 = arith.constant 5.000000e-01 : f32
    %7 = vector.broadcast %cst_5 : f32 to vector<8x256xf32>
    %8 = arith.mulf %7, %6 : vector<8x256xf32>
    %cst_6 = arith.constant 4.471500e-02 : f32
    %9 = vector.broadcast %cst_6 : f32 to vector<8x256xf32>
    %10 = arith.mulf %9, %6 : vector<8x256xf32>
    %11 = arith.mulf %10, %6 : vector<8x256xf32>
    %12 = arith.mulf %11, %6 : vector<8x256xf32>
    %13 = arith.addf %6, %12 : vector<8x256xf32>
    %cst_7 = arith.constant 0.797884583 : f32
    %14 = vector.broadcast %cst_7 : f32 to vector<8x256xf32>
    %15 = arith.mulf %14, %13 : vector<8x256xf32>
    %16 = math.tanh %15 : vector<8x256xf32>
    %cst_8 = arith.constant 1.000000e+00 : f32
    %17 = vector.broadcast %cst_8 : f32 to vector<8x256xf32>
    %18 = arith.addf %17, %16 : vector<8x256xf32>
    %19 = arith.mulf %8, %18 : vector<8x256xf32>
    %20 = arith.truncf %19 : vector<8x256xf32> to vector<8x256xbf16>
    %c0_9 = arith.constant 0 : index
    %c256 = arith.constant 256 : index
    %21 = vector.load %arg1[%c0_9, %c256] : memref<256x518xbf16, #tpu.memory_space<vmem>>, vector<256x256xbf16>
    %c0_10 = arith.constant 0 : index
    %c256_11 = arith.constant 256 : index
    %22 = vector.load %arg2[%c0_10, %c256_11] : memref<1x518xf32, #tpu.memory_space<vmem>>, vector<1x256xf32>
    %cst_12 = arith.constant dense<0.000000e+00> : vector<8x256xf32>
    %23 = tpu.matmul %20, %21, %cst_12 {dimension_numbers = #tpu.dot_dimension_numbers<[1], [0], [0], [1], [0, 0, 1, 1], [], []>} : vector<8x256xbf16>, vector<256x256xbf16>, vector<8x256xf32> -> vector<8x256xf32>
    %24 = vector.broadcast %22 : vector<1x256xf32> to vector<8x256xf32>
    %25 = arith.addf %23, %24 : vector<8x256xf32>
    %cst_13 = arith.constant 5.000000e-01 : f32
    %26 = vector.broadcast %cst_13 : f32 to vector<8x256xf32>
    %27 = arith.mulf %26, %25 : vector<8x256xf32>
    %cst_14 = arith.constant 4.471500e-02 : f32
    %28 = vector.broadcast %cst_14 : f32 to vector<8x256xf32>
    %29 = arith.mulf %28, %25 : vector<8x256xf32>
    %30 = arith.mulf %29, %25 : vector<8x256xf32>
    %31 = arith.mulf %30, %25 : vector<8x256xf32>
    %32 = arith.addf %25, %31 : vector<8x256xf32>
    %cst_15 = arith.constant 0.797884583 : f32
    %33 = vector.broadcast %cst_15 : f32 to vector<8x256xf32>
    %34 = arith.mulf %33, %32 : vector<8x256xf32>
    %35 = math.tanh %34 : vector<8x256xf32>
    %cst_16 = arith.constant 1.000000e+00 : f32
    %36 = vector.broadcast %cst_16 : f32 to vector<8x256xf32>
    %37 = arith.addf %36, %35 : vector<8x256xf32>
    %38 = arith.mulf %27, %37 : vector<8x256xf32>
    %39 = arith.truncf %38 : vector<8x256xf32> to vector<8x256xbf16>
    %c0_17 = arith.constant 0 : index
    %c512 = arith.constant 512 : index
    %40 = vector.load %arg1[%c0_17, %c512] : memref<256x518xbf16, #tpu.memory_space<vmem>>, vector<256x6xbf16>
    %c0_18 = arith.constant 0 : index
    %c512_19 = arith.constant 512 : index
    %41 = vector.load %arg2[%c0_18, %c512_19] : memref<1x518xf32, #tpu.memory_space<vmem>>, vector<1x6xf32>
    %cst_20 = arith.constant dense<0.000000e+00> : vector<8x6xf32>
    %42 = tpu.matmul %39, %40, %cst_20 {dimension_numbers = #tpu.dot_dimension_numbers<[1], [0], [0], [1], [0, 0, 1, 1], [], []>} : vector<8x256xbf16>, vector<256x6xbf16>, vector<8x6xf32> -> vector<8x6xf32>
    %43 = vector.broadcast %41 : vector<1x6xf32> to vector<8x6xf32>
    %44 = arith.addf %42, %43 : vector<8x6xf32>
    %c0_21 = arith.constant 0 : index
    %c0_22 = arith.constant 0 : index
    %45 = vector.load %arg3[%c0_21, %c0_22] : memref<8x6xf32, #tpu.memory_space<vmem>>, vector<8x6xf32>
    tpu.vector_store %arg3[%c0_21, %c0_22], %44 {strides = array<i32>} : memref<8x6xf32, #tpu.memory_space<vmem>>, vector<8x6xf32>,
    return
  }
}

</mosaic_0001>

<bundles_post_ra>
// kernel: tpu_custom_call.1
= control target key start
LH: loop header
LB: loop body
LE: loop exit
PB: predicated region body
PF: predicated region fallthrough
CT: control target
= control target key end

     0   :  { %v765_v2 = vmov 0.0   ;;  %vm35_vm0 = vcmask 130048   ;;  %s973_s0 = inlined_call_operand.vmem [shape: f32[8,16], index: 0, kind: input, shape index: {}]   ;;  %s974_s1 = inlined_call_operand.vmem [shape: bf16[256,518], index: 1, kind: input, shape index: {}]   ;;  %s975_s2 = inlined_call_operand.vmem [shape: f32[1,518], index: 2, kind: input, shape index: {}]   ;;  %s976_s3 = inlined_call_operand.hbm [shape: f32[8,6], index: 3, kind: output, shape index: {}]  }
   0x1   :  { %v666_v0 = vld [vmem:[%s974_s1 + $0x4] ss:$20 sps:$4 sm:$0xff]   ;;  %v668_v1 = vld [vmem:[%s974_s1] ss:$20 sps:$4 sm:$0xff]   ;;  %103 = vmatprep.mubr.f32.mxu0 %v765_v2  ;;  %v671_v5 = vld [vmem:[%s974_s1 + $0x8] ss:$20 sps:$4 sm:$0xff]  }
   0x2   :  { %v16_v3 = vld [vmem:[%s973_s0] sm:$0xff]  ;;  %659 = vmatprep.subr.bf16.mxu0 %v666_v0  ;;  %v672_v6 = vld [vmem:[%s974_s1 + $0x34] ss:$20 sps:$4 sm:$0xff]   ;;  %v675_v8 = vld [vmem:[%s974_s1 + $0x5c] ss:$20 sps:$4 sm:$0xff]  }
   0x3   :  { %v669_v4 = vld [vmem:[%s974_s1 + $0xc] ss:$20 sps:$4 sm:$0xff]   ;;  %661 = vmatpush1.bf16.msra.mxu0 %v668_v1  ;;  %v674_v7 = vld [vmem:[%s974_s1 + $0x30] ss:$20 sps:$4 sm:$0xff]   ;;  %v683_v13 = vld [vmem:[%s974_s1 + $0xa8] ss:$20 sps:$4 sm:$0xff]  }
   0x4   :  { %334 = vmatprep.subr.bf16.mxu1 %v669_v4  ;;  %v677_v9 = vld [vmem:[%s974_s1 + $0x58] ss:$20 sps:$4 sm:$0xff]   ;;  %v680_v11 = vld [vmem:[%s974_s1 + $0x80] ss:$20 sps:$4 sm:$0xff]   ;;  %v686_v15 = vld [vmem:[%s974_s1 + $0xd0] ss:$20 sps:$4 sm:$0xff]  }
   0x5   :  { %335 = vmatpush1.bf16.msra.mxu1 %v671_v5  ;;  %v678_v10 = vld [vmem:[%s974_s1 + $0x84] ss:$20 sps:$4 sm:$0xff]   ;;  %v681_v12 = vld [vmem:[%s974_s1 + $0xac] ss:$20 sps:$4 sm:$0xff]   ;;  %v684_v14 = vld [vmem:[%s974_s1 + $0xd4] ss:$20 sps:$4 sm:$0xff]  }
   0x6   :  { %586 = vmatmul.mubr.msk.f32.vlgmr.msra.gmra.mrb[0].mxu0 %vm35_vm0, %v16_v3  ;;  %336 = vmatprep.subr.bf16.mxu1 %v672_v6  ;;  %v687_v16 = vld [vmem:[%s974_s1 + $0xfc] ss:$20 sps:$4 sm:$0xff]   ;;  %v689_v17 = vld [vmem:[%s974_s1 + $0xf8] ss:$20 sps:$4 sm:$0xff]  }
   0x7   :  { %v690_v18 = vld [vmem:[%s974_s1 + $0x124] ss:$20 sps:$4 sm:$0xff]  }
   0x9   :  { %337 = vmatpush1.bf16.msra.mxu1 %v674_v7 }
   0xa   :  { %338 = vmatprep.subr.bf16.mxu1 %v675_v8 }
   0xd   :  { %339 = vmatpush1.bf16.msra.mxu1 %v677_v9 }
   0xe   :  { %340 = vmatprep.subr.bf16.mxu1 %v678_v10 }
  0x11   :  { %341 = vmatpush1.bf16.msra.mxu1 %v680_v11 }
  0x12   :  { %342 = vmatprep.subr.bf16.mxu1 %v681_v12 }
  0x15   :  { %343 = vmatpush1.bf16.msra.mxu1 %v683_v13 }
  0x16   :  { %344 = vmatprep.subr.bf16.mxu1 %v684_v14 }
  0x19   :  { %345 = vmatpush1.bf16.msra.mxu1 %v686_v15 }
  0x1a   :  { %346 = vmatprep.subr.bf16.mxu1 %v687_v16 }
  0x1b   :  { %8 = vsyncpa [#allocation3], 0  ;;  %v692_v19 = vld [vmem:[%s974_s1 + $0x120] ss:$20 sps:$4 sm:$0xff]   ;;  %v695_v21 = vld [vmem:[%s974_s1 + $0x148] ss:$20 sps:$4 sm:$0xff]   ;;  %v25_v36 = vlaneseq }
  0x1c   :  { %v693_v20 = vld [vmem:[%s974_s1 + $0x14c] ss:$20 sps:$4 sm:$0xff]   ;;  %v696_v22 = vld [vmem:[%s974_s1 + $0x174] ss:$20 sps:$4 sm:$0xff]   ;;  %v698_v23 = vld [vmem:[%s974_s1 + $0x170] ss:$20 sps:$4 sm:$0xff]  }
  0x1d   :  { %347 = vmatpush1.bf16.msra.mxu1 %v689_v17  ;;  %v699_v24 = vld [vmem:[%s974_s1 + $0x19c] ss:$20 sps:$4 sm:$0xff]   ;;  %v701_v25 = vld [vmem:[%s974_s1 + $0x198] ss:$20 sps:$4 sm:$0xff]   ;;  %v704_v27 = vld [vmem:[%s974_s1 + $0x1c0] ss:$20 sps:$4 sm:$0xff]  }
  0x1e   :  { %348 = vmatprep.subr.bf16.mxu1 %v690_v18  ;;  %v702_v26 = vld [vmem:[%s974_s1 + $0x1c4] ss:$20 sps:$4 sm:$0xff]   ;;  %v705_v28 = vld [vmem:[%s974_s1 + $0x1ec] ss:$20 sps:$4 sm:$0xff]   ;;  %v707_v29 = vld [vmem:[%s974_s1 + $0x1e8] ss:$20 sps:$4 sm:$0xff]  }
  0x1f   :  { %v708_v30 = vld [vmem:[%s974_s1 + $0x214] ss:$20 sps:$4 sm:$0xff]   ;;  %v710_v31 = vld [vmem:[%s974_s1 + $0x210] ss:$20 sps:$4 sm:$0xff]   ;;  %v713_v33 = vld [vmem:[%s974_s1 + $0x238] ss:$20 sps:$4 sm:$0xff]  }
  0x20   :  { %v711_v32 = vld [vmem:[%s974_s1 + $0x23c] ss:$20 sps:$4 sm:$0xff]   ;;  %v714_v34 = vld [vmem:[%s974_s1 + $0x264] ss:$20 sps:$4 sm:$0xff]   ;;  %v716_v35 = vld [vmem:[%s974_s1 + $0x260] ss:$20 sps:$4 sm:$0xff]  }
  0x21   :  { %349 = vmatpush1.bf16.msra.mxu1 %v692_v19  ;;  %v892_v37 = vshrl.u32 %v25_v36, 7  ;;  %v19_v39 = vld [vmem:[%s975_s2] sm:$0x3]  ;;  %v717_v3 = vld [vmem:[%s974_s1 + $0x150] ss:$20 sps:$4 sm:$0xff]   ;;  %s766_s7 = smov [#allocation2]  }
  0x22   :  { %350 = vmatprep.subr.bf16.mxu1 %v693_v20  ;;  %v718_v4 = vld [vmem:[%s974_s1 + $0x10] ss:$20 sps:$4 sm:$0xff]   ;;  %636 = vmatprep.subr.bf16.mxu0 %v717_v3  ;;  %v719_v5 = vld [vmem:[%s974_s1 + $0x178] ss:$20 sps:$4 sm:$0xff]   ;;  %v721_v7 = vld [vmem:[%s974_s1 + $0x1a0] ss:$20 sps:$4 sm:$0xff]  }
  0x23   :  { %v27_v38 = vsub.s32 0, %v892_v37  ;;  %v31_v40 = vsub.s32 1, %v892_v37  ;;  %637 = vmatpush3.bf16.msra.mxu0 %v718_v4  ;;  %v720_v6 = vld [vmem:[%s974_s1 + $0x38] ss:$20 sps:$4 sm:$0xff]   ;;  %v722_v8 = vld [vmem:[%s974_s1 + $0x60] ss:$20 sps:$4 sm:$0xff]  }
  0x24   :  { %638 = vmatprep.subr.bf16.mxu0 %v719_v5  ;;  %v723_v9 = vld [vmem:[%s974_s1 + $0x1c8] ss:$20 sps:$4 sm:$0xff]   ;;  %v725_v11 = vld [vmem:[%s974_s1 + $0x1f0] ss:$20 sps:$4 sm:$0xff]   ;;  %v727_v13 = vld [vmem:[%s974_s1 + $0x218] ss:$20 sps:$4 sm:$0xff]  }
  0x25   :  { %351 = vmatpush1.bf16.msra.mxu1 %v695_v21  ;;  %v28_v41 = vrot.slane %v19_v39, %v27_v38  ;;  %v32_v42 = vrot.slane %v19_v39, %v31_v40  ;;  %v724_v10 = vld [vmem:[%s974_s1 + $0x88] ss:$20 sps:$4 sm:$0xff]   ;;  %v726_v12 = vld [vmem:[%s974_s1 + $0xb0] ss:$20 sps:$4 sm:$0xff]   ;;  %v728_v14 = vld [vmem:[%s974_s1 + $0xd8] ss:$20 sps:$4 sm:$0xff]  }
  0x26   :  { %352 = vmatprep.subr.bf16.mxu1 %v696_v22  ;;  %v729_v15 = vld [vmem:[%s974_s1 + $0x240] ss:$20 sps:$4 sm:$0xff]   ;;  %v731_v17 = vld [vmem:[%s974_s1 + $0x268] ss:$20 sps:$4 sm:$0xff]   ;;  %s578_s8 = sshll.u32 %s766_s7, 4  ;;  %vm570_vm1 = vcmask 48128   ;;  %s579_s8 = int_to_ptr.vmem [resolvable:$true] %s578_s8 }
  0x27   :  { %639 = vmatpush3.bf16.msra.mxu0 %v720_v6  ;;  %v730_v16 = vld [vmem:[%s974_s1 + $0x100] ss:$20 sps:$4 sm:$0xff]   ;;  %v732_v18 = vld [vmem:[%s974_s1 + $0x128] ss:$20 sps:$4 sm:$0xff]   ;;  %s741_s9 = scalar_lea.vmem %s579_s8, 128  ;;  %p746_p1 = scmp.lt.s32.totalorder %s579_s8, %s579_s8 }
  0x28   :  { %640 = vmatprep.subr.bf16.mxu0 %v721_v7  ;;  %v162_v19 = vld [vmem:[%s975_s2 + $0x2] sm:$0x3]  ;;  %p742_p0 = scmp.ne.s32.totalorder %s579_s8, %s741_s9  ;;  %p747_p2 = scmp.lt.s32.totalorder %s741_s9, %s741_s9 }
  0x29   :  { %353 = vmatpush1.bf16.msra.mxu1 %v698_v23  ;;  %v167_v20 = vrot.slane %v162_v19, %v27_v38  ;;  %v171_v21 = vrot.slane %v162_v19, %v31_v40 }
  0x2a   :  { %354 = vmatprep.subr.bf16.mxu1 %v699_v24  ;;  %p748_p3 = por %p747_p2, %p746_p1 }
  0x2b   :  { %641 = vmatpush3.bf16.msra.mxu0 %v722_v8 }
  0x2c   :  { %642 = vmatprep.subr.bf16.mxu0 %v723_v9  ;;  %p749_p4 = pnand %p748_p3, %p742_p0 }
  0x2d   :  { %355 = vmatpush1.bf16.msra.mxu1 %v701_v25 }
  0x2e   :  { %356 = vmatprep.subr.bf16.mxu1 %v702_v26 }
  0x2f   :  { %643 = vmatpush3.bf16.msra.mxu0 %v724_v10 }
  0x30   :  { %644 = vmatprep.subr.bf16.mxu0 %v725_v11 }
  0x31   :  { %357 = vmatpush1.bf16.msra.mxu1 %v704_v27 }
  0x32   :  { %358 = vmatprep.subr.bf16.mxu1 %v705_v28 }
  0x33   :  { %645 = vmatpush3.bf16.msra.mxu0 %v726_v12 }
  0x34   :  { %646 = vmatprep.subr.bf16.mxu0 %v727_v13 }
  0x35   :  { %359 = vmatpush1.bf16.msra.mxu1 %v707_v29 }
  0x36   :  { %360 = vmatprep.subr.bf16.mxu1 %v708_v30 }
  0x37   :  { %647 = vmatpush3.bf16.msra.mxu0 %v728_v14 }
  0x38   :  { %648 = vmatprep.subr.bf16.mxu0 %v729_v15 }
  0x39   :  { %361 = vmatpush1.bf16.msra.mxu1 %v710_v31 }
  0x3a   :  { %362 = vmatprep.subr.bf16.mxu1 %v711_v32 }
  0x3b   :  { %649 = vmatpush3.bf16.msra.mxu0 %v730_v16 }
  0x3c   :  { %650 = vmatprep.subr.bf16.mxu0 %v731_v17 }
  0x3d   :  { %363 = vmatpush1.bf16.msra.mxu1 %v713_v33 }
  0x3e   :  { %364 = vmatprep.subr.bf16.mxu1 %v714_v34 }
  0x3f   :  { %651 = vmatpush3.bf16.msra.mxu0 %v732_v18 }
  0x41   :  { %365 = vmatpush1.bf16.msra.mxu1 %v716_v35 }
  0xd9   :  { %v105_v43 = vpop.f32.mrb[0].mxu0 }
  0xda   :  { %v106_v44 = vadd.f32 %v105_v43, %v28_v41  ;;  %v107_v45 = vpop.f32.mrb[1].mxu0 }
  0xdb   :  { %v108_v46 = vadd.f32 %v107_v45, %v32_v42 }
  0xdc   :  { %v112_v47 = vmul.f32 0.044715, %v106_v44  ;;  %v110_v59 = vmul.f32 0.5, %v106_v44 }
  0xdd   :  { %v113_v48 = vmul.f32 0.044715, %v108_v46  ;;  %v111_v61 = vmul.f32 0.5, %v108_v46 }
  0xde   :  { %v114_v49 = vmul.f32 %v112_v47, %v106_v44 }
  0xdf   :  { %v115_v50 = vmul.f32 %v113_v48, %v108_v46 }
  0xe0   :  { %v116_v51 = vmul.f32 %v114_v49, %v106_v44  ;;  %v619_v49 = vld [vmem:[%s975_s2 + $0x4] ss:$0 sm:$0xff] }
  0xe1   :  { %v117_v52 = vmul.f32 %v115_v50, %v108_v46 }
  0xe2   :  { %v118_v53 = vadd.f32 %v116_v51, %v106_v44 }
  0xe3   :  { %v119_v54 = vadd.f32 %v117_v52, %v108_v46 }
  0xe4   :  { %v120_v55 = vmul.f32 0.7978846, %v118_v53 }
  0xe5   :  { %v121_v56 = vmul.f32 0.7978846, %v119_v54 }
  0xe6   :  { %733 = vtanh.f32 %v120_v55 }
  0xe7   :  { %735 = vtanh.f32 %v121_v56 }
  0xf0   :  { %v734_v57 = vpop.eup %733 }
  0xf1   :  { %v736_v58 = vpop.eup %735  ;;  %v124_v60 = vadd.f32 1.0, %v734_v57 }
  0xf2   :  { %v125_v62 = vadd.f32 1.0, %v736_v58 }
  0xf3   :  { %v126_v63 = vmul.f32 %v124_v60, %v110_v59 }
  0xf4   :  { %v127_v0 = vmul.f32 %v125_v62, %v111_v61 }
  0xf5   :  { %v128_v2 = vpack.c.bf16 %v126_v63, %v126_v63 }
  0xf6   :  { %v129_v1 = vpack.c.bf16 %v127_v0, %v127_v0 }
  0xf8   :  { %366 = vmatprep.mubr.bf16.mxu1 %v129_v1 }
  0xf9   :  { %367 = vmatmul.mubr.bf16.vlgmr.msra.gmra.mrb[0].mxu1 %v128_v2 }
 0x1cc   :  { %v368_v22 = vpop.f32.mrb[0].mxu1 }
 0x1cd   :  { %v369_v23 = vadd.f32 %v368_v22, %v167_v20  ;;  %v370_v24 = vpop.f32.mrb[1].mxu1 }
 0x1ce   :  { %v371_v25 = vadd.f32 %v370_v24, %v171_v21  ;;  %v372_v26 = vpop.f32.mrb[2].mxu1 }
 0x1cf   :  { %v377_v27 = vmul.f32 0.044715, %v369_v23  ;;  %v373_v28 = vpop.f32.mrb[3].mxu1  ;;  %v375_v40 = vmul.f32 0.5, %v369_v23 }
 0x1d0   :  { %v378_v29 = vmul.f32 0.044715, %v371_v25  ;;  %v376_v42 = vmul.f32 0.5, %v371_v25 }
 0x1d1   :  { %v379_v30 = vmul.f32 %v377_v27, %v369_v23 }
 0x1d2   :  { %v380_v31 = vmul.f32 %v378_v29, %v371_v25 }
 0x1d3   :  { %v381_v32 = vmul.f32 %v379_v30, %v369_v23 }
 0x1d4   :  { %v382_v33 = vmul.f32 %v380_v31, %v371_v25 }
 0x1d5   :  { %v383_v34 = vadd.f32 %v381_v32, %v369_v23 }
 0x1d6   :  { %v384_v35 = vadd.f32 %v382_v33, %v371_v25 }
 0x1d7   :  { %v385_v36 = vmul.f32 0.7978846, %v383_v34 }
 0x1d8   :  { %v386_v39 = vmul.f32 0.7978846, %v384_v35 }
 0x1d9   :  { %737 = vtanh.f32 %v385_v36 }
 0x1da   :  { %739 = vtanh.f32 %v386_v39 }
 0x1e3   :  { %v738_v37 = vpop.eup %737 }
 0x1e4   :  { %v740_v38 = vpop.eup %739  ;;  %v389_v41 = vadd.f32 1.0, %v738_v37 }
 0x1e5   :  { %v390_v43 = vadd.f32 1.0, %v740_v38 }
 0x1e6   :  { %v391_v44 = vmul.f32 %v389_v41, %v375_v40 }
 0x1e7   :  { %v392_v45 = vmul.f32 %v390_v43, %v376_v42 }
 0x1e8   :  { %v393_v47 = vpack.c.bf16 %v391_v44, %v391_v44 }
 0x1e9   :  { %v394_v46 = vpack.c.bf16 %v392_v45, %v392_v45 }
 0x1eb   :  { %562 = vmatprep.mubr.bf16.mxu0 %v394_v46 }
 0x1ec   :  { %563 = vmatmul.mubr.bf16.vlgmr.msra.gmra.mrb[4].mxu0 %v393_v47 }
 0x2bf   :  { %v652_v48 = vpop.f32.mrb[4].mxu0 }
 0x2c0   :  { %v653_v50 = vpop.f32.mrb[5].mxu0 }
 0x2c1   :  { %v654_v51 = vadd.f32 %v653_v50, %v652_v48  ;;  %v655_v52 = vpop.f32.mrb[6].mxu0 }
 0x2c2   :  { %v656_v53 = vpop.f32.mrb[7].mxu0 }
 0x2c3   :  { %v565_v54 = vadd.f32 %v654_v51, %v619_v49 }
 0x2c5   :  { %571 = vst.msk [vmem:[#allocation2] sm:$0xff] %vm570_vm1, %v565_v54 }
 0x2c6   :  { %752 = shalt.err (!%p749_p4)
}
 0x2c7   :  { %s753_s2 = scalar_lea.hbm %s976_s3, 128 }
 0x2c8   :  { %p754_p5 = scmp.ne.s32.totalorder %s976_s3, %s753_s2  ;;  %p757_p6 = scmp.lt.u32.totalorder %s753_s2, %s976_s3 }
 0x2ca   :  { %p759_p7 = pnand %p757_p6, %p754_p5 }
 0x2cc   :  { %762 = shalt.err (!%p759_p7)
}
 0x2cd   :  { %581 = dma.vmem_to_hbm [thread:$0]  %s579_s8, 128, %s976_s3, [#allocation3]  }
 0x2ce   :  { %763 = dma.done.wait [#allocation3], 128  }
 0x2cf   :  { %764 = vsyncadd [#allocation3], 4294967168 }
 0x2d0   :  { %585 = vsyncpa [#allocation3], 1 }

</bundles_post_ra>
